<compile_context>
chip_gen: v6e
topology: v6e:2x2x1
jax: 0.10.0
libtpu: 0.0.40
codegen_flags: <defaults>
</compile_context>

<pallas_src>
import functools

import jax
import jax.numpy as jnp
from jax import lax
from jax.experimental import pallas as pl
from jax.experimental.pallas import tpu as pltpu


def _mlp_kernel(x_ref, w1_ref, b1_ref, w2_ref, b2_ref, w3_ref, b3_ref, o_ref):
    # In-kernel f32 -> bf16 cast of the only streamed operand; the VPU cast hides under the
    # MXU / DMA pipeline and halves HBM traffic vs a wrapper-side astype.
    x = x_ref[...].astype(jnp.bfloat16)

    # Layer 1: Linear (bf16 MXU operands, f32 accumulation) + ReLU (f32 VPU).
    h1 = jnp.dot(x, w1_ref[...], preferred_element_type=jnp.float32)
    h1 = jnp.maximum(h1 + b1_ref[...], 0.0)

    # Layer 2: Linear + ReLU.
    h2 = jnp.dot(h1.astype(jnp.bfloat16), w2_ref[...],
                 preferred_element_type=jnp.float32)
    h2 = jnp.maximum(h2 + b2_ref[...], 0.0)

    # Layer 3: contract w3 [1, h2] with h2 [tb, h2] on the feature dim -> [1, tb].
    # Rides the MXU (which has plenty of slack at K=32/128 depth) and lands directly in the
    # lane-dense output layout: no XLU cross-lane reduce, no transpose.
    logits = lax.dot_general(
        w3_ref[...], h2.astype(jnp.bfloat16),
        dimension_numbers=(((1,), (1,)), ((), ())),
        preferred_element_type=jnp.float32) + b3_ref[...]

    # Epilogue stays f32 (v5e-friendly); full-lane unmasked vst store.
    o_ref[...] = jax.nn.sigmoid(logits).astype(o_ref.dtype)


def _choose_tile(B, in_dim, h1, h2, block_b):
    """Pick the batch tile tb and number of grid steps."""
    if B <= 256:
        # Single block equal to the full array dims — always layout-legal, no padding needed.
        # (Tiny batches: not worth splitting across v7x TensorCores.)
        return B, 1

    # Requested tile, rounded down to a multiple of 128 (lane/sublane friendly).
    tb = max(128, (block_b // 128) * 128)

    # v7x megacore: guarantee >= 2 grid steps so both TensorCores get work.
    half = ((-(-B // 2)) + 127) // 128 * 128   # round_up(ceil(B/2), 128)
    tb = min(tb, half)

    # VMEM budget: keep the per-tile working set <= ~28 MiB so a big tile never OOMs
    # v7x's 64 MiB physical VMEM (and comfortably fits v5e/v6e with a raised scoped limit).
    per_row = (2 * in_dim * 4      # f32 x tile, double-buffered
               + in_dim * 2        # in-kernel bf16 copy of x
               + h1 * 6 + h2 * 6   # f32 + bf16 intermediates
               + 2 * 4)            # [1, tb] f32 output, double-buffered
    fixed = 2 * (in_dim * h1 + h1 * h2 + h2) * 2 + 2 * (h1 + h2 + 1) * 4
    budget = 28 * 1024 * 1024
    tb_cap = max(128, ((budget - fixed) // per_row) // 128 * 128)
    tb = min(tb, tb_cap)
    return tb, pl.cdiv(B, tb)


@functools.partial(jax.jit, static_argnames=("block_b",))
def binary_classifier_forward(x, params, block_b=4096):
    """Fused forward pass for the 3-layer binary classifier.

    x: [B, input_size] float32 (cast to bf16 inside the kernel)
    params: dict (see prepare_inference_params) with
            w1 [in, h1] bf16, b1 [1, h1] f32, w2 [h1, h2] bf16, b2 [1, h2] f32,
            w3 [1, h2] bf16 (row layout), b3 [1, 1] f32
    returns: [B, 1] float32 sigmoid probabilities
    """
    w1, b1 = params["w1"], params["b1"]
    w2, b2 = params["w2"], params["b2"]
    w3, b3 = params["w3"], params["b3"]

    B, in_dim = x.shape
    h1 = w1.shape[1]
    h2 = w2.shape[1]

    tb, nblk = _choose_tile(B, in_dim, h1, h2, block_b)
    grid = (nblk,)

    # Explicit scoped-VMEM limit: 2x the estimated working set, clamped to [32 MiB, 48 MiB]
    # (default scoped limit is 16 MiB on v5e / 32 MiB on v6e+; 48 MiB still fits v7x physical).
    per_row = 2 * in_dim * 4 + in_dim * 2 + h1 * 6 + h2 * 6 + 8
    fixed = 2 * (in_dim * h1 + h1 * h2 + h2) * 2 + 2 * (h1 + h2 + 1) * 4
    est = fixed + tb * per_row
    vmem_limit = int(min(48 * 2**20, max(32 * 2**20, 2 * est)))

    out = pl.pallas_call(
        _mlp_kernel,
        out_shape=jax.ShapeDtypeStruct((1, B), jnp.float32),
        grid_spec=pltpu.PrefetchScalarGridSpec(
            num_scalar_prefetch=0,
            grid=grid,
            in_specs=[
                pl.BlockSpec((tb, in_dim), lambda i: (i, 0)),    # x tile (only streamed input)
                pl.BlockSpec((in_dim, h1), lambda i: (0, 0)),    # w1 (resident, bf16)
                pl.BlockSpec((1, h1), lambda i: (0, 0)),         # b1 (f32)
                pl.BlockSpec((h1, h2), lambda i: (0, 0)),        # w2 (resident, bf16)
                pl.BlockSpec((1, h2), lambda i: (0, 0)),         # b2 (f32)
                pl.BlockSpec((1, h2), lambda i: (0, 0)),         # w3 row (bf16)
                pl.BlockSpec((1, 1), lambda i: (0, 0)),          # b3 (f32)
            ],
            out_specs=pl.BlockSpec((1, tb), lambda i: (0, i)),   # lane-dense output
        ),
        compiler_params=pltpu.CompilerParams(
            dimension_semantics=("parallel",),   # batch tiles shard across TCs (v7x megacore)
            vmem_limit_bytes=vmem_limit,
        ),
    )(x, w1, b1, w2, b2, w3, b3)

    # [1, B] -> [B, 1] (element order preserved; cheap wrapper-level reshape)
    return out.reshape(B, 1)


def init_params(key, input_size, hidden1=128, hidden2=64):
    """Deterministic f32 init mimicking PyTorch nn.Linear default (uniform +-1/sqrt(fan_in))."""
    ks = jax.random.split(key, 6)

    def lin(kw, kb, fan_in, fan_out):
        bound = 1.0 / jnp.sqrt(jnp.float32(fan_in))
        w = jax.random.uniform(kw, (fan_in, fan_out), jnp.float32, -bound, bound)
        b = jax.random.uniform(kb, (1, fan_out), jnp.float32, -bound, bound)
        return w, b

    w1, b1 = lin(ks[0], ks[1], input_size, hidden1)
    w2, b2 = lin(ks[2], ks[3], hidden1, hidden2)
    w3_col, b3 = lin(ks[4], ks[5], hidden2, 1)
    # w3 stored as [1, hidden2] row for the layer-3 dot_general.
    return {"w1": w1, "b1": b1, "w2": w2, "b2": b2, "w3": w3_col.T, "b3": b3}


def prepare_inference_params(params):
    """Cast weights to bf16 ONCE (outside the per-call jit); biases stay f32."""
    return {
        "w1": params["w1"].astype(jnp.bfloat16),
        "b1": params["b1"].astype(jnp.float32),
        "w2": params["w2"].astype(jnp.bfloat16),
        "b2": params["b2"].astype(jnp.float32),
        "w3": params["w3"].astype(jnp.bfloat16),
        "b3": params["b3"].astype(jnp.float32),
    }


def _reference(x, p):
    h1 = jnp.maximum(x @ p["w1"] + p["b1"], 0.0)
    h2 = jnp.maximum(h1 @ p["w2"] + p["b2"], 0.0)
    return jax.nn.sigmoid(h2 @ p["w3"].T + p["b3"])


if __name__ == "__main__":
    key = jax.random.PRNGKey(0)
    k_x, k_p, k_x2 = jax.random.split(key, 3)

    input_size = 32  # e.g. 32 tabular features
    params = init_params(k_p, input_size, hidden1=128, hidden2=64)
    infer_params = prepare_inference_params(params)   # bf16 weights, cast once

    # Case 1: small batch — single block equal to the full array dims.
    x_small = jax.random.normal(k_x, (8, input_size), jnp.float32)
    out_small = jax.block_until_ready(binary_classifier_forward(x_small, infer_params))
    ref_small = _reference(x_small, params)
    assert out_small.shape == (8, 1), out_small.shape
    # bf16 MXU operands -> loosened tolerance vs the f32 reference.
    assert jnp.allclose(out_small, ref_small, atol=2e-2, rtol=2e-2), "mismatch vs reference (small)"

    # Case 2: multi-block grid (640 rows -> tb=384 via the v7x half-split cap, 2 steps,
    # second block has masked boundary rows).
    x_big = jax.random.normal(k_x2, (640, input_size), jnp.float32)
    out_big = jax.block_until_ready(binary_classifier_forward(x_big, infer_params))
    ref_big = _reference(x_big, params)
    assert out_big.shape == (640, 1), out_big.shape
    assert jnp.allclose(out_big, ref_big, atol=2e-2, rtol=2e-2), "mismatch vs reference (big)"

    print("KERNEL_OK")
</pallas_src>

<mosaic_0001>
module attributes {stable_mosaic.version = 11 : i64} {
  func.func @_mlp_kernel(%arg0: i32, %arg1: memref<8x32xf32, #tpu.memory_space<vmem>>, %arg2: memref<32x128xbf16, #tpu.memory_space<vmem>>, %arg3: memref<1x128xf32, #tpu.memory_space<vmem>>, %arg4: memref<128x64xbf16, #tpu.memory_space<vmem>>, %arg5: memref<1x64xf32, #tpu.memory_space<vmem>>, %arg6: memref<1x64xbf16, #tpu.memory_space<vmem>>, %arg7: memref<1x1xf32, #tpu.memory_space<vmem>>, %arg8: memref<1x8xf32, #tpu.memory_space<vmem>>) attributes {dimension_semantics = [#tpu.dimension_semantics<parallel>], iteration_bounds = array<i64: 1>, scalar_prefetch = 0 : i64, scratch_operands = 0 : i64, tpu.core_type = #tpu.core_type<tc>, window_params = [{transform_indices = @transform_0, window_bounds = array<i64: 8, 32>}, {pipeline_mode = #tpu.pipeline_mode<synchronous>, transform_indices = @transform_1, window_bounds = array<i64: 32, 128>}, {pipeline_mode = #tpu.pipeline_mode<synchronous>, transform_indices = @transform_2, window_bounds = array<i64: 1, 128>}, {pipeline_mode = #tpu.pipeline_mode<synchronous>, transform_indices = @transform_3, window_bounds = array<i64: 128, 64>}, {pipeline_mode = #tpu.pipeline_mode<synchronous>, transform_indices = @transform_4, window_bounds = array<i64: 1, 64>}, {pipeline_mode = #tpu.pipeline_mode<synchronous>, transform_indices = @transform_5, window_bounds = array<i64: 1, 64>}, {pipeline_mode = #tpu.pipeline_mode<synchronous>, transform_indices = @transform_6, window_bounds = array<i64: 1, 1>}, {transform_indices = @transform_7, window_bounds = array<i64: 1, 8>}]} {
    %c0 = arith.constant 0 : index
    %c0_0 = arith.constant 0 : index
    %0 = vector.load %arg1[%c0, %c0_0] : memref<8x32xf32, #tpu.memory_space<vmem>>, vector<8x32xf32>
    %1 = arith.truncf %0 : vector<8x32xf32> to vector<8x32xbf16>
    %c0_1 = arith.constant 0 : index
    %c0_2 = arith.constant 0 : index
    %2 = vector.load %arg2[%c0_1, %c0_2] : memref<32x128xbf16, #tpu.memory_space<vmem>>, vector<32x128xbf16>
    %cst = arith.constant dense<0.000000e+00> : vector<8x128xf32>
    %3 = tpu.matmul %1, %2, %cst {dimension_numbers = #tpu.dot_dimension_numbers<[1], [0], [0], [1], [0, 0, 1, 1], [], []>} : vector<8x32xbf16>, vector<32x128xbf16>, vector<8x128xf32> -> vector<8x128xf32>
    %c0_3 = arith.constant 0 : index
    %c0_4 = arith.constant 0 : index
    %4 = vector.load %arg3[%c0_3, %c0_4] : memref<1x128xf32, #tpu.memory_space<vmem>>, vector<1x128xf32>
    %5 = vector.broadcast %4 : vector<1x128xf32> to vector<8x128xf32>
    %6 = arith.addf %3, %5 : vector<8x128xf32>
    %cst_5 = arith.constant 0.000000e+00 : f32
    %7 = vector.broadcast %cst_5 : f32 to vector<8x128xf32>
    %8 = arith.maximumf %6, %7 : vector<8x128xf32>
    %9 = arith.truncf %8 : vector<8x128xf32> to vector<8x128xbf16>
    %c0_6 = arith.constant 0 : index
    %c0_7 = arith.constant 0 : index
    %10 = vector.load %arg4[%c0_6, %c0_7] : memref<128x64xbf16, #tpu.memory_space<vmem>>, vector<128x64xbf16>
    %cst_8 = arith.constant dense<0.000000e+00> : vector<8x64xf32>
    %11 = tpu.matmul %9, %10, %cst_8 {dimension_numbers = #tpu.dot_dimension_numbers<[1], [0], [0], [1], [0, 0, 1, 1], [], []>} : vector<8x128xbf16>, vector<128x64xbf16>, vector<8x64xf32> -> vector<8x64xf32>
    %c0_9 = arith.constant 0 : index
    %c0_10 = arith.constant 0 : index
    %12 = vector.load %arg5[%c0_9, %c0_10] : memref<1x64xf32, #tpu.memory_space<vmem>>, vector<1x64xf32>
    %13 = vector.broadcast %12 : vector<1x64xf32> to vector<8x64xf32>
    %14 = arith.addf %11, %13 : vector<8x64xf32>
    %cst_11 = arith.constant 0.000000e+00 : f32
    %15 = vector.broadcast %cst_11 : f32 to vector<8x64xf32>
    %16 = arith.maximumf %14, %15 : vector<8x64xf32>
    %c0_12 = arith.constant 0 : index
    %c0_13 = arith.constant 0 : index
    %17 = vector.load %arg6[%c0_12, %c0_13] : memref<1x64xbf16, #tpu.memory_space<vmem>>, vector<1x64xbf16>
    %18 = arith.truncf %16 : vector<8x64xf32> to vector<8x64xbf16>
    %cst_14 = arith.constant dense<0.000000e+00> : vector<1x8xf32>
    %19 = tpu.matmul %17, %18, %cst_14 {dimension_numbers = #tpu.dot_dimension_numbers<[1], [1], [0], [0], [0, 0, 1, 0], [], []>} : vector<1x64xbf16>, vector<8x64xbf16>, vector<1x8xf32> -> vector<1x8xf32>
    %c0_15 = arith.constant 0 : index
    %c0_16 = arith.constant 0 : index
    %20 = vector.load %arg7[%c0_15, %c0_16] : memref<1x1xf32, #tpu.memory_space<vmem>>, vector<1x1xf32>
    %21 = vector.broadcast %20 : vector<1x1xf32> to vector<1x8xf32>
    %22 = arith.addf %19, %21 : vector<1x8xf32>
    %23 = arith.negf %22 : vector<1x8xf32>
    %24 = math.exp %23 : vector<1x8xf32>
    %cst_17 = arith.constant 1.000000e+00 : f32
    %25 = vector.broadcast %cst_17 : f32 to vector<1x8xf32>
    %26 = arith.addf %25, %24 : vector<1x8xf32>
    %27 = arith.divf %25, %26 : vector<1x8xf32>
    %c0_18 = arith.constant 0 : index
    %c0_19 = arith.constant 0 : index
    %28 = vector.load %arg8[%c0_18, %c0_19] : memref<1x8xf32, #tpu.memory_space<vmem>>, vector<1x8xf32>
    tpu.vector_store %arg8[%c0_18, %c0_19], %27 {strides = array<i32>} : memref<1x8xf32, #tpu.memory_space<vmem>>, vector<1x8xf32>,
    return
  }
  func.func @transform_0(%arg0: i32) -> (i32, i32) {
    %c0_i32 = arith.constant 0 : i32
    %c0_i32_0 = arith.constant 0 : i32
    return %arg0, %c0_i32 : i32, i32
  }
  func.func @transform_1(%arg0: i32) -> (i32, i32) {
    %c0_i32 = arith.constant 0 : i32
    %c0_i32_0 = arith.constant 0 : i32
    %c0_i32_1 = arith.constant 0 : i32
    return %c0_i32, %c0_i32_0 : i32, i32
  }
  func.func @transform_2(%arg0: i32) -> (i32, i32) {
    %c0_i32 = arith.constant 0 : i32
    %c0_i32_0 = arith.constant 0 : i32
    %c0_i32_1 = arith.constant 0 : i32
    return %c0_i32, %c0_i32_0 : i32, i32
  }
  func.func @transform_3(%arg0: i32) -> (i32, i32) {
    %c0_i32 = arith.constant 0 : i32
    %c0_i32_0 = arith.constant 0 : i32
    %c0_i32_1 = arith.constant 0 : i32
    return %c0_i32, %c0_i32_0 : i32, i32
  }
  func.func @transform_4(%arg0: i32) -> (i32, i32) {
    %c0_i32 = arith.constant 0 : i32
    %c0_i32_0 = arith.constant 0 : i32
    %c0_i32_1 = arith.constant 0 : i32
    return %c0_i32, %c0_i32_0 : i32, i32
  }
  func.func @transform_5(%arg0: i32) -> (i32, i32) {
    %c0_i32 = arith.constant 0 : i32
    %c0_i32_0 = arith.constant 0 : i32
    %c0_i32_1 = arith.constant 0 : i32
    return %c0_i32, %c0_i32_0 : i32, i32
  }
  func.func @transform_6(%arg0: i32) -> (i32, i32) {
    %c0_i32 = arith.constant 0 : i32
    %c0_i32_0 = arith.constant 0 : i32
    %c0_i32_1 = arith.constant 0 : i32
    return %c0_i32, %c0_i32_0 : i32, i32
  }
  func.func @transform_7(%arg0: i32) -> (i32, i32) {
    %c0_i32 = arith.constant 0 : i32
    %c0_i32_0 = arith.constant 0 : i32
    return %c0_i32, %arg0 : i32, i32
  }
}

</mosaic_0001>

<bundles_post_ra>
// kernel: binary_classifier_forward.1
= control target key start
LH: loop header
LB: loop body
LE: loop exit
PB: predicated region body
PF: predicated region fallthrough
CT: control target
= control target key end

     0   :  { %s493_s0 = inlined_call_operand.vmem [shape: f32[8,32], index: 0, kind: input, shape index: {}]   ;;  %s494_s1 = inlined_call_operand.vmem [shape: bf16[32,128], index: 1, kind: input, shape index: {}]   ;;  %s495_s2 = inlined_call_operand.vmem [shape: f32[1,128], index: 2, kind: input, shape index: {}]   ;;  %s496_s3 = inlined_call_operand.vmem [shape: bf16[128,64], index: 3, kind: input, shape index: {}]   ;;  %s497_s4 = inlined_call_operand.vmem [shape: f32[1,64], index: 4, kind: input, shape index: {}]   ;;  %s498_s5 = inlined_call_operand.vmem [shape: bf16[1,64], index: 5, kind: input, shape index: {}]   ;;  %s499_s6 = inlined_call_operand.<no memory space> [shape: f32[1,1], index: 6, kind: input, shape index: {}]   ;;  %s500_s7 = inlined_call_operand.hbm [shape: f32[1,8], index: 7, kind: output, shape index: {}]  }
   0x1   :  { %v12_v0 = vstv %s499_s6 }
   0x2   :  { %13 = vst [vmem:[#allocation2] sm:$0x1] %v12_v0 }
   0x3   :  { %v362_v1 = vld [vmem:[%s494_s1 + $0x8] sm:$0xff]   ;;  %v398_v2 = vmov 0.0   ;;  %v363_v3 = vld [vmem:[%s494_s1] sm:$0xff]   ;;  %vm399_vm0 = vmmov 0   ;;  %v364_v5 = vld [vmem:[%s496_s3 + $0x38] sm:$0xff]   ;;  %vm55_vm1 = vcmask 261120  }
   0x4   :  { %323 = vmatprep.subr.bf16.mxu0 %v398_v2  ;;  %331 = vmatprep.subr.bf16.mxu1 %v398_v2  ;;  %v30_v4 = vld [vmem:[%s493_s0] sm:$0xff]  ;;  %v365_v7 = vld [vmem:[%s496_s3 + $0x30] sm:$0xff]   ;;  %v366_v8 = vld [vmem:[%s496_s3 + $0x28] sm:$0xff]  }
   0x5   :  { %324 = vmatpush3.bf16.msra.mxu0 %v362_v1  ;;  %327 = vmatprep.mubr.msk.bf16.mxu0 %vm399_vm0, %v398_v2  ;;  %v31_v6 = vpack.c.bf16 %v30_v4, %v30_v4 }
   0x6   :  { %325 = vmatprep.subr.bf16.mxu0 %v398_v2  ;;  %347 = vmatprep.mubr.msk.bf16.mxu1 %vm399_vm0, %v398_v2 }
   0x7   :  { %332 = vmatpush3.bf16.msra.mxu1 %v364_v5 }
   0x8   :  { %333 = vmatprep.subr.bf16.mxu1 %v398_v2 }
   0x9   :  { %326 = vmatpush3.bf16.msra.mxu0 %v363_v3 }
   0xa   :  { %351 = vmatprep.subr.bf16.mxu0 %v398_v2 }
   0xb   :  { %334 = vmatpush3.bf16.msra.mxu1 %v365_v7 }
   0xc   :  { %328 = vmatmul.mubr.msk.bf16.vlgmr.msra.gmra.mxu0 %vm55_vm1, %v31_v6  ;;  %335 = vmatprep.subr.bf16.mxu1 %v398_v2 }
   0xd   :  { %353 = vmatprep.mubr.msk.bf16.mxu0 %vm399_vm0, %v398_v2 }
   0xe   :  { %14 = vsyncpa [#allocation4], 0  ;;  %v367_v9 = vld [vmem:[%s496_s3 + $0x20] sm:$0xff]   ;;  %v368_v10 = vld [vmem:[%s496_s3 + $0x18] sm:$0xff]   ;;  %v400_v23 = vmov 0   ;;  %vm225_vm2 = vcmask 523264   ;;  %v221_v34 = vlaneseq }
   0xf   :  { %336 = vmatpush3.bf16.msra.mxu1 %v366_v8  ;;  %v369_v11 = vld [vmem:[%s496_s3 + $0x10] sm:$0xff]   ;;  %v370_v12 = vld [vmem:[%s496_s3 + $0x8] sm:$0xff]   ;;  %v371_v13 = vld [vmem:[%s496_s3] sm:$0xff]   ;;  %361 = vset.pattern.permute.xlu0 %v400_v23  ;;  %vm278_vm3 = vcmask 57344  }
  0x10   :  { %337 = vmatprep.subr.bf16.mxu1 %v398_v2  ;;  %v294_v14 = vld [vmem:[%s495_s2] ss:$0 sm:$0xff]  ;;  %v222_v35 = vshrl.u32 %v221_v34, 7 }
  0x11   :  { %v215_v22 = vld [vmem:[#allocation2] sm:$0x1] }
  0x12   :  { %218 = vperm.xlu0 %361, %v215_v22   ;;  %v298_v24 = vld [vmem:[%s497_s4] ss:$0 sm:$0xff]  ;;  %v223_v36 = vsub.s32 0, %v222_v35  ;;  %s401_s4 = smov [#allocation3]  }
  0x13   :  { %338 = vmatpush3.bf16.msra.mxu1 %v367_v9  ;;  %v213_v33 = vld [vmem:[%s498_s5] sm:$0x1]  ;;  %s286_s26 = sshll.u32 %s401_s4, 4  ;;  %s287_s26 = int_to_ptr.vmem [resolvable:$true] %s286_s26 }
  0x14   :  { %339 = vmatprep.subr.bf16.mxu1 %v398_v2  ;;  %s376_s5 = scalar_lea.vmem %s287_s26, 16  ;;  %s380_s27 = scalar_lea.vmem %s287_s26, 32 }
  0x15   :  { %p377_p0 = scmp.ne.s32.totalorder %s287_s26, %s376_s5  ;;  %p381_p1 = scmp.lt.s32.totalorder %s287_s26, %s287_s26 }
  0x16   :  { %p382_p2 = scmp.lt.s32.totalorder %s380_s27, %s376_s5 }
  0x17   :  { %340 = vmatpush3.bf16.msra.mxu1 %v368_v10 }
  0x18   :  { %341 = vmatprep.subr.bf16.mxu1 %v398_v2  ;;  %p383_p3 = por %p382_p2, %p381_p1 }
  0x1a   :  { %p384_p4 = pnand %p383_p3, %p377_p0 }
  0x1b   :  { %342 = vmatpush3.bf16.msra.mxu1 %v369_v11 }
  0x1c   :  { %343 = vmatprep.subr.bf16.mxu1 %v398_v2 }
  0x1f   :  { %344 = vmatpush3.bf16.msra.mxu1 %v370_v12 }
  0x20   :  { %345 = vmatprep.subr.bf16.mxu1 %v398_v2 }
  0x23   :  { %346 = vmatpush3.bf16.msra.mxu1 %v371_v13 }
  0x8d   :  { %v219_v37 = vpop.permute.xlu0 %218 }
  0x8e   :  { %v224_v38 = vrot.slane %v219_v37, %v223_v36 }
  0xcc   :  { %v93_v15 = vpop.f32.mrf.mxu0 }
  0xcd   :  { %v94_v16 = vadd.f32 %v294_v14, %v93_v15 }
  0xce   :  { %v329_v17 = vpop.f32.mrf.mxu0 }
  0xcf   :  { %v99_v18 = vmax.f32 %v94_v16, 0.0 }
  0xd0   :  { %v96_v19 = vpop.f32.mrf.mxu0 }
  0xd1   :  { %v100_v20 = vpack.c.bf16 %v99_v18, %v99_v18 }
  0xd2   :  { %v330_v21 = vpop.f32.mrf.mxu0 }
  0xd3   :  { %348 = vmatmul.mubr.bf16.vlgmr.msra.gmra.mxu1 %v100_v20 }
 0x193   :  { %v206_v25 = vpop.f32.mrf.mxu1 }
 0x194   :  { %v207_v26 = vadd.f32 %v298_v24, %v206_v25 }
 0x195   :  { %v349_v27 = vpop.f32.mrf.mxu1 }
 0x196   :  { %v212_v28 = vmax.f32 %v207_v26, 0.0 }
 0x197   :  { %v209_v29 = vpop.f32.mrf.mxu1 }
 0x198   :  { %v214_v30 = vpack.c.bf16 %v212_v28, %v212_v28 }
 0x199   :  { %v350_v31 = vpop.f32.mrf.mxu1 }
 0x19a   :  { %v230_v32 = vsel %vm225_vm2, %v214_v30, 0 }
 0x19b   :  { %352 = vmatpush3.bf16.xpose.msra.mxu0 %v230_v32 }
 0x1a2   :  { %354 = vmatmul.mubr.msk.bf16.vlgmr.msra.gmra.mxu0 %vm225_vm2, %v213_v33 }
 0x262   :  { %v266_v39 = vpop.f32.mrf.mxu0 }
 0x263   :  { %v267_v40 = vadd.f32 %v266_v39, %v224_v38 }
 0x264   :  { %v355_v41 = vpop.f32.mrf.mxu0 }
 0x265   :  { %v308_v42 = vmul.f32 -1.442695, %v267_v40 }
 0x266   :  { %v269_v43 = vpop.f32.mrf.mxu0 }
 0x267   :  { %372 = vpow2.f32 %v308_v42 }
 0x268   :  { %v356_v44 = vpop.f32.mrf.mxu0 }
 0x274   :  { %v373_v45 = vpop.eup %372 }
 0x275   :  { %v275_v46 = vadd.f32 1.0, %v373_v45 }
 0x277   :  { %374 = vrcp.f32 %v275_v46 }
 0x284   :  { %v375_v47 = vpop.eup %374 }
 0x285   :  { %279 = vst.msk [vmem:[#allocation3] sm:$0x1] %vm278_vm3, %v375_v47 }
 0x286   :  { %387 = shalt.err (!%p384_p4)
}
 0x287   :  { %289 = dma.vmem_to_hbm [thread:$0]  %s287_s26, 16, %s500_s7, [#allocation4]  }
 0x288   :  { %396 = dma.done.wait [#allocation4], 16  }
 0x289   :  { %397 = vsyncadd [#allocation4], 4294967280 }
 0x28a   :  { %293 = vsyncpa [#allocation4], 1 }

</bundles_post_ra>
